<compile_context>
chip_gen: v7x
topology: tpu7x:2x2x1
jax: 0.10.0
libtpu: 0.0.40
codegen_flags: <defaults>
</compile_context>

<pallas_src>
import functools

import jax
import jax.numpy as jnp
from jax.experimental import pallas as pl
from jax.experimental.pallas import tpu as pltpu

LANE = 128
SUBLANE = 8


def _round_up(n, m):
    return ((n + m - 1) // m) * m


def encoder_kernel(x_ref, c_ref, w1x_ref, w1c_ref, b1_ref, w23_ref, b23_ref,
                   *out_refs, split_at):
    # fc1 without the concat: x @ W1[:Dx] + labels @ W1[Dx:], f32 accumulation.
    h = jnp.dot(x_ref[...], w1x_ref[...], preferred_element_type=jnp.float32)
    h = h + jnp.dot(c_ref[...], w1c_ref[...],
                    preferred_element_type=jnp.float32)
    # Bias + ReLU on the f32 accumulator (safe on v5e: no bf16 VPU needed).
    h = jnp.maximum(h + b1_ref[...], 0.0)
    if w23_ref.dtype != jnp.float32:
        h = h.astype(w23_ref.dtype)            # back to bf16 for the MXU
    # Fused fc2|fc3: single MXU push into a lane-dense slab.
    o = jnp.dot(h, w23_ref[...], preferred_element_type=jnp.float32)
    o = o + b23_ref[...]
    if split_at is None:
        out_refs[0][...] = o                   # fused [mean|log_var] slab
    else:
        out_refs[0][...] = o[:, :split_at]     # mean  (lane-aligned split)
        out_refs[1][...] = o[:, split_at:]     # log_var


def prepare_kernel_params(params, input_dim, compute_dtype=jnp.float32):
    """One-time split/fuse/pad/cast of nn.Linear-style params (exact zero pad)."""
    w1, b1 = params["w1"], params["b1"]
    w2, b2 = params["w2"], params["b2"]
    w3, b3 = params["w3"], params["b3"]
    H = w1.shape[1]
    L = w2.shape[1]
    Hp = _round_up(H, LANE)            # lane-padded hidden width
    Op = _round_up(2 * L, LANE)        # lane-padded fused [mean|log_var] width

    w1x = w1[:input_dim].astype(compute_dtype)   # (Dx, H)
    w1c = w1[input_dim:].astype(compute_dtype)   # (C,  H)
    w1x_p = jnp.zeros((input_dim, Hp), compute_dtype).at[:, :H].set(w1x)
    w1c_p = jnp.zeros((w1c.shape[0], Hp), compute_dtype).at[:, :H].set(w1c)
    # Biases stay f32: added to the f32 MXU accumulator.
    b1_p = jnp.zeros((1, Hp), jnp.float32).at[:, :H].set(b1.astype(jnp.float32))

    w23 = jnp.concatenate([w2, w3], axis=1).astype(compute_dtype)   # (H, 2L)
    b23 = jnp.concatenate([b2, b3], axis=1).astype(jnp.float32)     # (1, 2L)
    w23_p = jnp.zeros((Hp, Op), compute_dtype).at[:H, :2 * L].set(w23)
    b23_p = jnp.zeros((1, Op), jnp.float32).at[:, :2 * L].set(b23)

    return {"w1x": w1x_p, "w1c": w1c_p, "b1": b1_p,
            "w23": w23_p, "b23": b23_p}


def _pick_batch_tile(B, Dx, C, Hp, Op, in_itemsize, weight_bytes):
    """Batch tile from a VMEM budget; >=2 grid steps for mid/large B (v7x)."""
    budget = 32 * 1024 * 1024                        # target scoped-VMEM footprint
    avail = max(budget - 2 * weight_bytes, 4 * 1024 * 1024)
    per_row = (2 * (Dx + C) * in_itemsize            # double-buffered input tiles
               + 2 * Op * 4                          # double-buffered f32 outputs
               + Hp * 4)                             # f32 h intermediate
    cap = min(8192, max(SUBLANE, (avail // per_row) // SUBLANE * SUBLANE))

    if B <= cap:
        if B >= 256:
            # Guarantee >=2 grid steps so both v7x TensorCores get work;
            # tile must then be a multiple of 8 (sublane constraint).
            TB = min(cap, _round_up(pl.cdiv(B, 2), SUBLANE))
        else:
            TB = B          # single full-dim block; launch-overhead bound anyway
    else:
        TB = cap
    Bp = B if TB == B else _round_up(B, TB)

    vmem_need = 2 * weight_bytes + TB * per_row + (2 << 20)
    # Explicit limit: above v5e's 16 MiB default, below v7x's 64 MiB physical.
    vmem_limit = int(min(max(2 * vmem_need, 32 << 20), 60 << 20))
    return TB, Bp, vmem_limit


@functools.partial(jax.jit, static_argnames=("latent_dim",))
def encoder_forward(x, class_labels, kparams, latent_dim):
    """x: (B, Dx), class_labels: (B, C) -> (mean, log_var), each (B, latent_dim)."""
    w1x, w1c, b1 = kparams["w1x"], kparams["w1c"], kparams["b1"]
    w23, b23 = kparams["w23"], kparams["b23"]
    cdtype = w23.dtype
    x = x.astype(cdtype)
    class_labels = class_labels.astype(cdtype)

    B, Dx = x.shape
    C = class_labels.shape[1]
    Hp, Op = w23.shape
    in_itemsize = jnp.dtype(cdtype).itemsize
    weight_bytes = ((w1x.size + w1c.size + w23.size) * in_itemsize
                    + (b1.size + b23.size) * 4)
    # TODO(synk): if 2*weight_bytes approaches v7x's 64 MiB VMEM, add an
    # N-tiled grid axis for w23 instead of keeping it resident.
    TB, Bp, vmem_limit = _pick_batch_tile(B, Dx, C, Hp, Op, in_itemsize,
                                          weight_bytes)

    if Bp != B:
        pad = Bp - B
        x = jnp.pad(x, ((0, pad), (0, 0)))
        class_labels = jnp.pad(class_labels, ((0, pad), (0, 0)))

    act_spec = lambda cols: pl.BlockSpec((TB, cols), lambda i: (i, 0))
    const_spec = lambda a: pl.BlockSpec(a.shape, lambda i: (0, 0))

    split = (latent_dim % LANE == 0) and (Op == 2 * latent_dim)
    if split:
        out_shape = (jax.ShapeDtypeStruct((Bp, latent_dim), jnp.float32),
                     jax.ShapeDtypeStruct((Bp, latent_dim), jnp.float32))
        out_specs = (act_spec(latent_dim), act_spec(latent_dim))
        split_at = latent_dim
    else:
        out_shape = jax.ShapeDtypeStruct((Bp, Op), jnp.float32)
        out_specs = act_spec(Op)
        split_at = None

    out = pl.pallas_call(
        functools.partial(encoder_kernel, split_at=split_at),
        out_shape=out_shape,
        grid=(Bp // TB,),
        in_specs=[act_spec(Dx), act_spec(C),
                  const_spec(w1x), const_spec(w1c), const_spec(b1),
                  const_spec(w23), const_spec(b23)],
        out_specs=out_specs,
        compiler_params=pltpu.CompilerParams(
            dimension_semantics=("parallel",),
            vmem_limit_bytes=vmem_limit),
    )(x, class_labels, w1x, w1c, b1, w23, b23)

    # Padded batch rows (ReLU(b1) garbage) are always sliced off here.
    if split:
        mean, log_var = out
        if Bp != B:
            mean, log_var = mean[:B], log_var[:B]
    else:
        slab = out if Bp == B else out[:B]
        mean = slab[:, :latent_dim]
        log_var = slab[:, latent_dim:2 * latent_dim]
    return mean, log_var
    # TODO(synk): at tiny B this is launch-overhead bound; fuse the
    # reparameterization + first decoder fc into this same pallas_call.
    # TODO(synk): for large num_classes, pass integer labels and gather w1c
    # rows in-kernel instead of the dense one-hot matmul.


def init_params(key, input_dim, hidden_dim, latent_dim, num_classes):
    """Deterministic init matching nn.Linear shapes (uniform +/- 1/sqrt(fan_in))."""
    ks = jax.random.split(key, 6)

    def lin(kw, kb, fan_in, fan_out):
        bound = 1.0 / jnp.sqrt(jnp.float32(fan_in))
        w = jax.random.uniform(kw, (fan_in, fan_out), jnp.float32, -bound, bound)
        b = jax.random.uniform(kb, (1, fan_out), jnp.float32, -bound, bound)
        return w, b

    w1, b1 = lin(ks[0], ks[1], input_dim + num_classes, hidden_dim)
    w2, b2 = lin(ks[2], ks[3], hidden_dim, latent_dim)
    w3, b3 = lin(ks[4], ks[5], hidden_dim, latent_dim)
    return {"w1": w1, "b1": b1, "w2": w2, "b2": b2, "w3": w3, "b3": b3}


def _reference(x, labels, params):
    xc = jnp.concatenate([x, labels], axis=-1)
    h = jnp.maximum(xc @ params["w1"] + params["b1"], 0.0)
    return h @ params["w2"] + params["b2"], h @ params["w3"] + params["b3"]


if __name__ == "__main__":
    key = jax.random.PRNGKey(0)
    B, input_dim, hidden_dim, latent_dim, num_classes = 8, 32, 32, 16, 4

    k_x, k_c, k_p = jax.random.split(key, 3)
    x = jax.random.normal(k_x, (B, input_dim), dtype=jnp.float32)
    class_labels = jax.nn.one_hot(
        jax.random.randint(k_c, (B,), 0, num_classes), num_classes,
        dtype=jnp.float32)

    params = init_params(k_p, input_dim, hidden_dim, latent_dim, num_classes)
    mean_ref, logvar_ref = _reference(x, class_labels, params)

    # 1) f32 path (module semantics).  Tolerance covers possible reduced-
    #    precision MXU passes for f32 inputs at default dot precision.
    kp32 = prepare_kernel_params(params, input_dim, compute_dtype=jnp.float32)
    mean, log_var = encoder_forward(x, class_labels, kp32, latent_dim=latent_dim)
    jax.block_until_ready((mean, log_var))
    assert mean.shape == (B, latent_dim) and log_var.shape == (B, latent_dim)
    assert jnp.allclose(mean, mean_ref, atol=5e-3, rtol=5e-3)
    assert jnp.allclose(log_var, logvar_ref, atol=5e-3, rtol=5e-3)

    # 2) bf16 weights/activations + f32 accumulation (bandwidth-bound fast path).
    kp16 = prepare_kernel_params(params, input_dim, compute_dtype=jnp.bfloat16)
    mean16, logvar16 = encoder_forward(x, class_labels, kp16,
                                       latent_dim=latent_dim)
    jax.block_until_ready((mean16, logvar16))
    assert jnp.allclose(mean16, mean_ref, atol=3e-2, rtol=3e-2)
    assert jnp.allclose(logvar16, logvar_ref, atol=3e-2, rtol=3e-2)

    # 3) latent_dim % 128 == 0 -> split lane-dense outputs (no slice copies).
    params128 = init_params(jax.random.PRNGKey(1), input_dim, hidden_dim, 128,
                            num_classes)
    mref128, lvref128 = _reference(x, class_labels, params128)
    kp128 = prepare_kernel_params(params128, input_dim,
                                  compute_dtype=jnp.bfloat16)
    m128, lv128 = encoder_forward(x, class_labels, kp128, latent_dim=128)
    jax.block_until_ready((m128, lv128))
    assert m128.shape == (B, 128) and lv128.shape == (B, 128)
    assert jnp.allclose(m128, mref128, atol=3e-2, rtol=3e-2)
    assert jnp.allclose(lv128, lvref128, atol=3e-2, rtol=3e-2)

    print("KERNEL_OK")
</pallas_src>

<mosaic_0001>
module attributes {stable_mosaic.version = 11 : i64} {
  func.func @encoder_kernel(%arg0: i32, %arg1: memref<8x32xf32, #tpu.memory_space<vmem>>, %arg2: memref<8x4xf32, #tpu.memory_space<vmem>>, %arg3: memref<32x128xf32, #tpu.memory_space<vmem>>, %arg4: memref<4x128xf32, #tpu.memory_space<vmem>>, %arg5: memref<1x128xf32, #tpu.memory_space<vmem>>, %arg6: memref<128x128xf32, #tpu.memory_space<vmem>>, %arg7: memref<1x128xf32, #tpu.memory_space<vmem>>, %arg8: memref<8x128xf32, #tpu.memory_space<vmem>>) attributes {dimension_semantics = [#tpu.dimension_semantics<parallel>], iteration_bounds = array<i64: 1>, scalar_prefetch = 0 : i64, scratch_operands = 0 : i64, tpu.core_type = #tpu.core_type<tc>, window_params = [{transform_indices = @transform_0, window_bounds = array<i64: 8, 32>}, {transform_indices = @transform_1, window_bounds = array<i64: 8, 4>}, {pipeline_mode = #tpu.pipeline_mode<synchronous>, transform_indices = @transform_2, window_bounds = array<i64: 32, 128>}, {pipeline_mode = #tpu.pipeline_mode<synchronous>, transform_indices = @transform_3, window_bounds = array<i64: 4, 128>}, {pipeline_mode = #tpu.pipeline_mode<synchronous>, transform_indices = @transform_4, window_bounds = array<i64: 1, 128>}, {pipeline_mode = #tpu.pipeline_mode<synchronous>, transform_indices = @transform_5, window_bounds = array<i64: 128, 128>}, {pipeline_mode = #tpu.pipeline_mode<synchronous>, transform_indices = @transform_6, window_bounds = array<i64: 1, 128>}, {transform_indices = @transform_7, window_bounds = array<i64: 8, 128>}]} {
    %c0 = arith.constant 0 : index
    %c0_0 = arith.constant 0 : index
    %0 = vector.load %arg1[%c0, %c0_0] : memref<8x32xf32, #tpu.memory_space<vmem>>, vector<8x32xf32>
    %c0_1 = arith.constant 0 : index
    %c0_2 = arith.constant 0 : index
    %1 = vector.load %arg3[%c0_1, %c0_2] : memref<32x128xf32, #tpu.memory_space<vmem>>, vector<32x128xf32>
    %cst = arith.constant dense<0.000000e+00> : vector<8x128xf32>
    %2 = tpu.matmul %0, %1, %cst {dimension_numbers = #tpu.dot_dimension_numbers<[1], [0], [0], [1], [0, 0, 1, 1], [], []>} : vector<8x32xf32>, vector<32x128xf32>, vector<8x128xf32> -> vector<8x128xf32>
    %c0_3 = arith.constant 0 : index
    %c0_4 = arith.constant 0 : index
    %3 = vector.load %arg2[%c0_3, %c0_4] : memref<8x4xf32, #tpu.memory_space<vmem>>, vector<8x4xf32>
    %c0_5 = arith.constant 0 : index
    %c0_6 = arith.constant 0 : index
    %4 = vector.load %arg4[%c0_5, %c0_6] : memref<4x128xf32, #tpu.memory_space<vmem>>, vector<4x128xf32>
    %cst_7 = arith.constant dense<0.000000e+00> : vector<8x128xf32>
    %5 = tpu.matmul %3, %4, %cst_7 {dimension_numbers = #tpu.dot_dimension_numbers<[1], [0], [0], [1], [0, 0, 1, 1], [], []>} : vector<8x4xf32>, vector<4x128xf32>, vector<8x128xf32> -> vector<8x128xf32>
    %6 = arith.addf %2, %5 : vector<8x128xf32>
    %c0_8 = arith.constant 0 : index
    %c0_9 = arith.constant 0 : index
    %7 = vector.load %arg5[%c0_8, %c0_9] : memref<1x128xf32, #tpu.memory_space<vmem>>, vector<1x128xf32>
    %8 = vector.broadcast %7 : vector<1x128xf32> to vector<8x128xf32>
    %9 = arith.addf %6, %8 : vector<8x128xf32>
    %cst_10 = arith.constant 0.000000e+00 : f32
    %10 = vector.broadcast %cst_10 : f32 to vector<8x128xf32>
    %11 = arith.maximumf %9, %10 : vector<8x128xf32>
    %c0_11 = arith.constant 0 : index
    %c0_12 = arith.constant 0 : index
    %12 = vector.load %arg6[%c0_11, %c0_12] : memref<128x128xf32, #tpu.memory_space<vmem>>, vector<128x128xf32>
    %cst_13 = arith.constant dense<0.000000e+00> : vector<8x128xf32>
    %13 = tpu.matmul %11, %12, %cst_13 {dimension_numbers = #tpu.dot_dimension_numbers<[1], [0], [0], [1], [0, 0, 1, 1], [], []>} : vector<8x128xf32>, vector<128x128xf32>, vector<8x128xf32> -> vector<8x128xf32>
    %c0_14 = arith.constant 0 : index
    %c0_15 = arith.constant 0 : index
    %14 = vector.load %arg7[%c0_14, %c0_15] : memref<1x128xf32, #tpu.memory_space<vmem>>, vector<1x128xf32>
    %15 = vector.broadcast %14 : vector<1x128xf32> to vector<8x128xf32>
    %16 = arith.addf %13, %15 : vector<8x128xf32>
    %c0_16 = arith.constant 0 : index
    %c0_17 = arith.constant 0 : index
    %17 = vector.load %arg8[%c0_16, %c0_17] : memref<8x128xf32, #tpu.memory_space<vmem>>, vector<8x128xf32>
    tpu.vector_store %arg8[%c0_16, %c0_17], %16 {strides = array<i32>} : memref<8x128xf32, #tpu.memory_space<vmem>>, vector<8x128xf32>,
    return
  }
  func.func @transform_0(%arg0: i32) -> (i32, i32) {
    %c0_i32 = arith.constant 0 : i32
    %c0_i32_0 = arith.constant 0 : i32
    return %arg0, %c0_i32 : i32, i32
  }
  func.func @transform_1(%arg0: i32) -> (i32, i32) {
    %c0_i32 = arith.constant 0 : i32
    %c0_i32_0 = arith.constant 0 : i32
    return %arg0, %c0_i32 : i32, i32
  }
  func.func @transform_2(%arg0: i32) -> (i32, i32) {
    %c0_i32 = arith.constant 0 : i32
    %c0_i32_0 = arith.constant 0 : i32
    %c0_i32_1 = arith.constant 0 : i32
    return %c0_i32, %c0_i32_0 : i32, i32
  }
  func.func @transform_3(%arg0: i32) -> (i32, i32) {
    %c0_i32 = arith.constant 0 : i32
    %c0_i32_0 = arith.constant 0 : i32
    %c0_i32_1 = arith.constant 0 : i32
    return %c0_i32, %c0_i32_0 : i32, i32
  }
  func.func @transform_4(%arg0: i32) -> (i32, i32) {
    %c0_i32 = arith.constant 0 : i32
    %c0_i32_0 = arith.constant 0 : i32
    %c0_i32_1 = arith.constant 0 : i32
    return %c0_i32, %c0_i32_0 : i32, i32
  }
  func.func @transform_5(%arg0: i32) -> (i32, i32) {
    %c0_i32 = arith.constant 0 : i32
    %c0_i32_0 = arith.constant 0 : i32
    %c0_i32_1 = arith.constant 0 : i32
    return %c0_i32, %c0_i32_0 : i32, i32
  }
  func.func @transform_6(%arg0: i32) -> (i32, i32) {
    %c0_i32 = arith.constant 0 : i32
    %c0_i32_0 = arith.constant 0 : i32
    %c0_i32_1 = arith.constant 0 : i32
    return %c0_i32, %c0_i32_0 : i32, i32
  }
  func.func @transform_7(%arg0: i32) -> (i32, i32) {
    %c0_i32 = arith.constant 0 : i32
    %c0_i32_0 = arith.constant 0 : i32
    return %arg0, %c0_i32 : i32, i32
  }
}

</mosaic_0001>

<bundles_post_ra>
// kernel: encoder_forward.1
= control target key start
LH: loop header
LB: loop body
LE: loop exit
PB: predicated region body
PF: predicated region fallthrough
CT: control target
= control target key end

     0   :  { %12 = vsyncpa [#allocation3], 0  ;;  %s579_s0 = inlined_call_operand.vmem [shape: f32[8,32], index: 0, kind: input, shape index: {}]   ;;  %s580_s1 = inlined_call_operand.vmem [shape: f32[8,4], index: 1, kind: input, shape index: {}]   ;;  %s581_s2 = inlined_call_operand.hbm [shape: f32[32,128], index: 2, kind: input, shape index: {}]   ;;  %s582_s3 = inlined_call_operand.vmem [shape: f32[4,128], index: 3, kind: input, shape index: {}]   ;;  %s583_s4 = inlined_call_operand.vmem [shape: f32[1,128], index: 4, kind: input, shape index: {}]   ;;  %s584_s5 = inlined_call_operand.hbm [shape: f32[128,128], index: 5, kind: input, shape index: {}]   ;;  %s585_s6 = inlined_call_operand.vmem [shape: f32[1,128], index: 6, kind: input, shape index: {}]   ;;  %s586_s7 = inlined_call_operand.vmem [shape: f32[8,128], index: 7, kind: output, shape index: {}]  }
   0x1   :  { %13 = vsyncpa [#allocation5], 0  ;;  %s487_s24 = smov [#allocation2]   ;;  %s439_s28 = scalar_lea.hbm %s581_s2, 512 }
   0x2   :  { %s23_s25 = sshll.u32 %s487_s24, 4  ;;  %p440_p0 = scmp.ne.s32.totalorder %s581_s2, %s439_s28  ;;  %s24_s25 = int_to_ptr.vmem [resolvable:$true] %s23_s25 }
   0x3   :  { %p443_p1 = scmp.lt.u32.totalorder %s439_s28, %s581_s2 }
   0x5   :  { %p445_p2 = pnand %p443_p1, %p440_p0 }
   0x7   :  { %448 = shalt.err (!%p445_p2)
}
   0x8   :  { %s449_s10 = scalar_lea.vmem %s24_s25, 512  ;;  %p454_p4 = scmp.lt.s32.totalorder %s24_s25, %s24_s25 }
   0x9   :  { %p450_p3 = scmp.ne.s32.totalorder %s24_s25, %s449_s10  ;;  %p455_p5 = scmp.lt.s32.totalorder %s449_s10, %s449_s10 }
   0xb   :  { %p456_p6 = por %p455_p5, %p454_p4 }
   0xd   :  { %p457_p7 = pnand %p456_p6, %p450_p3 }
   0xf   :  { %460 = shalt.err (!%p457_p7)
}
  0x10   :  { %s488_s11 = smov 128   ;;  %s489_s12 = smov 8  }
  0x11   :  { %29 = dma.hbm_to_vmem [thread:$0]  %s581_s2, 512, %s24_s25, [#allocation3], %s488_s11, %s488_s11, %s489_s12  }
  0x12   :  { %s490_s15 = smov [#allocation4]   ;;  %s461_s19 = scalar_lea.hbm %s584_s5, 2048 }
  0x13   :  { %s39_s16 = sshll.u32 %s490_s15, 4  ;;  %p462_p8 = scmp.ne.s32.totalorder %s584_s5, %s461_s19  ;;  %s40_s16 = int_to_ptr.vmem [resolvable:$true] %s39_s16 }
  0x14   :  { %p465_p9 = scmp.lt.u32.totalorder %s461_s19, %s584_s5 }
  0x16   :  { %p467_p10 = pnand %p465_p9, %p462_p8 }
  0x18   :  { %470 = shalt.err (!%p467_p10)
}
  0x19   :  { %s471_s24 = scalar_lea.vmem %s40_s16, 2048  ;;  %p476_p12 = scmp.lt.s32.totalorder %s40_s16, %s40_s16 }
  0x1a   :  { %p472_p11 = scmp.ne.s32.totalorder %s40_s16, %s471_s24  ;;  %p477_p13 = scmp.lt.s32.totalorder %s471_s24, %s471_s24 }
  0x1c   :  { %p478_p0 = por %p477_p13, %p476_p12 }
  0x1e   :  { %p479_p1 = pnand %p478_p0, %p472_p11 }
  0x20   :  { %482 = shalt.err (!%p479_p1)
}
  0x21   :  { %45 = dma.hbm_to_vmem [thread:$0]  %s584_s5, 2048, %s40_s16, [#allocation5], %s488_s11, %s488_s11, %s489_s12  }
  0x22   :  { %483 = dma.done.wait [#allocation3], 512  }
  0x23   :  { %484 = vsyncadd [#allocation3], 4294966784 }
  0x24   :  { %485 = dma.done.wait [#allocation5], 2048  }
  0x25   :  { %486 = vsyncadd [#allocation5], 4294965248  ;;  %v491_v0 = vmov 0.0   ;;  %vm492_vm0 = vmmov 0   ;;  %v493_v1 = vmov 0.0|0.0   ;;  %vm65_vm1 = vcmask 1043456  }
  0x26   :  { %351 = vmatprep.subr.mxu1 %v491_v0  ;;  %353 = vmatprep.mubr.msk.f32.mxu1 %vm492_vm0, %v491_v0  ;;  %vm61_vm2 = vcmask 31744   ;;  %v60_v2 = vld [vmem:[%s582_s3] sm:$0xf]  ;;  %v56_v5 = vld [vmem:[#allocation2 + $0x8] sm:$0xff]  ;;  %v57_v6 = vld [vmem:[#allocation2 + $0x10] sm:$0xff]  ;;  %vm139_vm3 = vcmask 261120  }
  0x27   :  { %408 = vmatprep.subr.bf16.mxu0 %v493_v1  ;;  %399 = vmatprep.mubr.msk.f32.mxu0 %vm492_vm0, %v491_v0  ;;  %v59_v3 = vld [vmem:[%s580_s1] sm:$0xff]  ;;  %v58_v7 = vld [vmem:[#allocation2 + $0x18] sm:$0xff]  ;;  %v223_v10 = vld [vmem:[#allocation4 + $0x8] sm:$0xff] }
  0x28   :  { %v55_v4 = vld [vmem:[#allocation2] sm:$0xff]  ;;  %352 = vmatpush3.msk.msra.mxu1 %vm65_vm1, %v60_v2  ;;  %v224_v12 = vld [vmem:[#allocation4 + $0x10] sm:$0xff]  ;;  %v225_v13 = vld [vmem:[#allocation4 + $0x18] sm:$0xff]  ;;  %v406_v14 = vpack.c.bf16 %v58_v7, %v57_v6 }
  0x29   :  { %354 = vmatmul.mubr.msk.f32.vlgmr.msra.gmra.mrb[0].mxu1 %vm61_vm2, %v59_v3  ;;  %402 = vmatprep.subr.bf16.mxu1 %v493_v1  ;;  %v403_v8 = vpack.c.bf16 %v56_v5, %v55_v4  ;;  %v222_v9 = vld [vmem:[#allocation4] sm:$0xff]  ;;  %v412_v15 = vpack.c.bf16 %v225_v13, %v224_v12  ;;  %v227_v17 = vld [vmem:[#allocation4 + $0x28] sm:$0xff]  ;;  %v228_v20 = vld [vmem:[#allocation4 + $0x30] sm:$0xff] }
  0x2a   :  { %364 = vmatprep.mubr.msk.f32.mxu1 %vm492_vm0, %v491_v0  ;;  %v409_v11 = vpack.c.bf16 %v223_v10, %v222_v9  ;;  %v226_v16 = vld [vmem:[#allocation4 + $0x20] sm:$0xff]  ;;  %v229_v21 = vld [vmem:[#allocation4 + $0x38] sm:$0xff]  ;;  %v231_v24 = vld [vmem:[#allocation4 + $0x48] sm:$0xff] }
  0x2b   :  { %404 = vmatpush3.bf16.msra.mxu1 %v403_v8  ;;  %v54_v18 = vld [vmem:[%s579_s0] sm:$0xff]  ;;  %v415_v19 = vpack.c.bf16 %v227_v17, %v226_v16  ;;  %v418_v22 = vpack.c.bf16 %v229_v21, %v228_v20  ;;  %v232_v26 = vld [vmem:[#allocation4 + $0x50] sm:$0xff]  ;;  %v233_v27 = vld [vmem:[#allocation4 + $0x58] sm:$0xff] }
  0x2c   :  { %405 = vmatprep.subr.bf16.mxu1 %v493_v1  ;;  %410 = vmatpush3.bf16.msra.mxu0 %v409_v11  ;;  %v230_v23 = vld [vmem:[#allocation4 + $0x40] sm:$0xff]  ;;  %v424_v28 = vpack.c.bf16 %v233_v27, %v232_v26  ;;  %v235_v30 = vld [vmem:[#allocation4 + $0x68] sm:$0xff]  ;;  %v236_v32 = vld [vmem:[#allocation4 + $0x70] sm:$0xff] }
  0x2d   :  { %411 = vmatprep.subr.bf16.mxu0 %v493_v1  ;;  %v421_v25 = vpack.c.bf16 %v231_v24, %v230_v23  ;;  %v234_v29 = vld [vmem:[#allocation4 + $0x60] sm:$0xff]  ;;  %v237_v33 = vld [vmem:[#allocation4 + $0x78] sm:$0xff] }
  0x2e   :  { %v427_v31 = vpack.c.bf16 %v235_v30, %v234_v29  ;;  %v430_v34 = vpack.c.bf16 %v237_v33, %v236_v32  ;;  %v325_v38 = vld [vmem:[%s583_s4] ss:$0 sm:$0xff] }
  0x2f   :  { %407 = vmatpush3.bf16.msra.mxu1 %v406_v14  ;;  %v326_v43 = vld [vmem:[%s585_s6] ss:$0 sm:$0xff] }
  0x30   :  { %413 = vmatpush3.bf16.msra.mxu0 %v412_v15 }
  0x31   :  { %414 = vmatprep.subr.bf16.mxu0 %v493_v1 }
  0x32   :  { %365 = vmatmul.mubr.msk.f32.vlgmr.msra.gmra.mrb[2].mxu1 %vm139_vm3, %v54_v18 }
  0x34   :  { %416 = vmatpush3.bf16.msra.mxu0 %v415_v19 }
  0x35   :  { %417 = vmatprep.subr.bf16.mxu0 %v493_v1 }
  0x38   :  { %419 = vmatpush3.bf16.msra.mxu0 %v418_v22 }
  0x39   :  { %420 = vmatprep.subr.bf16.mxu0 %v493_v1 }
  0x3c   :  { %422 = vmatpush3.bf16.msra.mxu0 %v421_v25 }
  0x3d   :  { %423 = vmatprep.subr.bf16.mxu0 %v493_v1 }
  0x40   :  { %425 = vmatpush3.bf16.msra.mxu0 %v424_v28 }
  0x41   :  { %426 = vmatprep.subr.bf16.mxu0 %v493_v1 }
  0x44   :  { %428 = vmatpush3.bf16.msra.mxu0 %v427_v31 }
  0x45   :  { %429 = vmatprep.subr.bf16.mxu0 %v493_v1 }
  0x48   :  { %431 = vmatpush3.bf16.msra.mxu0 %v430_v34 }
  0xfc   :  { %v135_v35 = vpop.f32.mrb[0].mxu1 }
  0xfd   :  { %v355_v36 = vpop.f32.mrb[1].mxu1 }
 0x105   :  { %v209_v37 = vpop.f32.mrb[2].mxu1 }
 0x106   :  { %v210_v39 = vadd.f32 %v209_v37, %v135_v35  ;;  %v366_v40 = vpop.f32.mrb[3].mxu1 }
 0x108   :  { %v220_v41 = vadd.f32 %v325_v38, %v210_v39 }
 0x10a   :  { %v221_v42 = vmax.f32 %v220_v41, 0.0 }
 0x10c   :  { %400 = vmatmul.mubr.f32.vlgmr.msra.gmra.mrb[0].mxu0 %v221_v42 }
 0x1df   :  { %v311_v44 = vpop.f32.mrb[0].mxu0 }
 0x1e0   :  { %v312_v45 = vadd.f32 %v326_v43, %v311_v44  ;;  %v401_v46 = vpop.f32.mrb[1].mxu0 }
 0x1e2   :  { %315 = vst [vmem:[%s586_s7] sm:$0xff] %v312_v45 }
 0x1e3   :  { %320 = vsyncpa [#allocation3], 1 }
 0x1e4   :  { %321 = vsyncpa [#allocation5], 1 }

</bundles_post_ra>
